<compile_context>
chip_gen: v6e
topology: v6e:2x2x1
jax: 0.10.0
libtpu: 0.0.40
codegen_flags: <defaults>
</compile_context>

<pallas_src>
import functools

import jax
import jax.numpy as jnp
from jax import lax
from jax.experimental import pallas as pl
from jax.experimental.pallas import tpu as pltpu


# ----------------------------- Pallas kernel --------------------------------
def _diff_loss_kernel(packed_ref, out_ref, *, valid_b, tile_b):
    i = pl.program_id(0)

    @pl.when(i == 0)
    def _():
        out_ref[0, 0] = 0.0   # sum |l1 - l2|  (== sum b)
        out_ref[0, 1] = 0.0   # sum |l1 - 1|
        out_ref[0, 2] = 0.0   # sum |l2 - 1|

    blk = packed_ref[...].astype(jnp.float32)       # (8, TB), batch on lanes
    x0, x1 = blk[0:1, :], blk[1:2, :]
    y0, y1 = blk[2:3, :], blk[3:4, :]
    z0, z1 = blk[4:5, :], blk[5:6, :]

    # Needed entries of J^T J per batch element.
    uu = x0 * x0 + y0 * y0 + z0 * z0                # (1, TB)
    vv = x1 * x1 + y1 * y1 + z1 * z1
    uv = x0 * x1 + y0 * y1 + z0 * z1

    a = uu + vv
    d = uu - vv
    b = jnp.sqrt(4.0 * uv * uv + d * d)             # == l1 - l2 >= 0
    l1 = 0.5 * (a + b)
    l2 = 0.5 * (a - b)

    s_conf = b                                      # |l1 - l2|
    s1 = jnp.abs(l1 - 1.0)
    s2 = jnp.abs(l2 - 1.0)

    # Mask out lanes past the true batch size (zero-padded lanes would
    # otherwise contribute |0 - 1| = 1 to the stretch sums).
    lane = lax.broadcasted_iota(jnp.int32, (1, tile_b), 1)
    mask = (i * tile_b + lane) < valid_b
    zeros = jnp.zeros_like(s_conf)

    out_ref[0, 0] = out_ref[0, 0] + jnp.sum(jnp.where(mask, s_conf, zeros))
    out_ref[0, 1] = out_ref[0, 1] + jnp.sum(jnp.where(mask, s1, zeros))
    out_ref[0, 2] = out_ref[0, 2] + jnp.sum(jnp.where(mask, s2, zeros))


def diff_loss_pallas(dfx, dfy, dfz, alpha_conf=1.0, alpha_stretch=1.0, tile_b=2048):
    """DiffLoss forward given the three gradient arrays (B, D)."""
    B = dfx.shape[0]

    # Pack the 6 used columns lane-dense: (8, B_pad), rows = x0,x1,y0,y1,z0,z1,0,0.
    cols = jnp.stack(
        [dfx[:, 0], dfx[:, 1], dfy[:, 0], dfy[:, 1], dfz[:, 0], dfz[:, 1]],
        axis=0,
    ).astype(jnp.float32)                                       # (6, B)

    tb = max(128, min(tile_b, pl.cdiv(B, 128) * 128))           # lane tile, mult of 128
    b_pad = pl.cdiv(B, tb) * tb
    packed = jnp.zeros((8, b_pad), jnp.float32).at[:6, :B].set(cols)
    n_tiles = b_pad // tb

    kernel = functools.partial(_diff_loss_kernel, valid_b=B, tile_b=tb)
    sums = pl.pallas_call(
        kernel,
        out_shape=jax.ShapeDtypeStruct((1, 3), jnp.float32),
        grid=(n_tiles,),
        in_specs=[pl.BlockSpec((8, tb), lambda i: (0, i))],
        out_specs=pl.BlockSpec((1, 3), lambda i: (0, 0), memory_space=pltpu.SMEM),
        compiler_params=pltpu.CompilerParams(
            dimension_semantics=("arbitrary",),                  # scalar accumulator axis
        ),
    )(packed)

    inv_b = 1.0 / float(B)
    l_conf = sums[0, 0] * inv_b
    l_stretch = (sums[0, 1] + sums[0, 2]) * inv_b
    return alpha_conf * l_conf + alpha_stretch * l_stretch


# ----------------------------- plain-JAX glue --------------------------------
def make_gradients(q, W):
    """Mirror of torch.autograd.grad(p[:, 0], q, ones_like(p[:, 0])) x3."""
    # TODO(synk): torch.autograd.grad itself is realized via jax.grad (glue),
    # not inside the Pallas kernel.
    def scalar_fn(qq):
        p = jnp.tanh(qq @ W)          # synthetic p(q), (B, C)
        return jnp.sum(p[:, 0])       # VJP with an all-ones cotangent on p[:, 0]

    g = jax.grad(scalar_fn)
    return g(q), g(q), g(q)           # module computes the same grad three times


def diff_loss_reference(dfx, dfy, dfz, alpha_conf=1.0, alpha_stretch=1.0):
    """Pure-JAX reference matching the PyTorch forward exactly."""
    J = jnp.stack([dfx, dfy, dfz], axis=-1).transpose(0, 2, 1)   # (B, 3, D)
    JtJ = jnp.einsum("bkd,bke->bde", J, J)                       # (B, D, D)
    uu = JtJ[:, 0, 0]
    vv = JtJ[:, 1, 1]
    uv = JtJ[:, 0, 1]
    a = uu + vv
    b = jnp.sqrt(4 * uv**2 + (uu - vv) ** 2)
    l1 = 0.5 * (a + b)
    l2 = 0.5 * (a - b)
    l_conf = jnp.mean(jnp.abs(l1 - l2))
    l_stretch = jnp.mean(jnp.abs(l1 - 1.0)) + jnp.mean(jnp.abs(l2 - 1.0))
    return alpha_conf * l_conf + alpha_stretch * l_stretch


if __name__ == "__main__":
    B, D, C = 8, 16, 4   # batch, q feature dim (>= 2), p channel dim

    key = jax.random.PRNGKey(0)
    kq, kw, k1, k2, k3 = jax.random.split(key, 5)
    q = jax.random.normal(kq, (B, D), dtype=jnp.float32)
    W = jax.random.normal(kw, (D, C), dtype=jnp.float32) * 0.5   # synthetic net q -> p

    # Module-faithful path (dfx == dfy == dfz, as in the PyTorch forward).
    dfx, dfy, dfz = make_gradients(q, W)
    loss = jax.block_until_ready(diff_loss_pallas(dfx, dfy, dfz, 1.0, 1.0))
    ref = diff_loss_reference(dfx, dfy, dfz, 1.0, 1.0)
    assert jnp.allclose(loss, ref, rtol=1e-5, atol=1e-5), (loss, ref)

    # Extra validation with three distinct gradients (exercises b > 0, distinct
    # eigenvalues, non-trivial alphas).
    gx = jax.random.normal(k1, (B, D), dtype=jnp.float32)
    gy = jax.random.normal(k2, (B, D), dtype=jnp.float32)
    gz = jax.random.normal(k3, (B, D), dtype=jnp.float32)
    loss2 = jax.block_until_ready(diff_loss_pallas(gx, gy, gz, 0.7, 1.3))
    ref2 = diff_loss_reference(gx, gy, gz, 0.7, 1.3)
    assert jnp.allclose(loss2, ref2, rtol=1e-5, atol=1e-5), (loss2, ref2)

    print("KERNEL_OK")
</pallas_src>

<mosaic_0001>
module attributes {stable_mosaic.version = 11 : i64} {
  func.func @_diff_loss_kernel(%arg0: i32, %arg1: memref<8x128xf32, #tpu.memory_space<vmem>>, %arg2: memref<1x3xf32, #tpu.memory_space<smem>>) attributes {dimension_semantics = [#tpu.dimension_semantics<arbitrary>], iteration_bounds = array<i64: 1>, scalar_prefetch = 0 : i64, scratch_operands = 0 : i64, tpu.core_type = #tpu.core_type<tc>, window_params = [{transform_indices = @transform_0, window_bounds = array<i64: 8, 128>}, {transform_indices = @transform_1, window_bounds = array<i64: 1, 3>}]} {
    %c0_i32 = arith.constant 0 : i32
    %0 = arith.cmpi eq, %arg0, %c0_i32 : i32
    %1 = arith.extui %0 : i1 to i32
    %c0_i32_0 = arith.constant 0 : i32
    %2 = arith.cmpi ne, %1, %c0_i32_0 : i32
    scf.if %2 {
      %cst_20 = arith.constant 0.000000e+00 : f32
      %c0_21 = arith.constant 0 : index
      %c0_22 = arith.constant 0 : index
      %76 = memref.load %arg2[%c0_21, %c0_22] : memref<1x3xf32, #tpu.memory_space<smem>>
      memref.store %cst_20, %arg2[%c0_21, %c0_22] : memref<1x3xf32, #tpu.memory_space<smem>>
      %cst_23 = arith.constant 0.000000e+00 : f32
      %c0_24 = arith.constant 0 : index
      %c1_25 = arith.constant 1 : index
      %77 = memref.load %arg2[%c0_24, %c1_25] : memref<1x3xf32, #tpu.memory_space<smem>>
      memref.store %cst_23, %arg2[%c0_24, %c1_25] : memref<1x3xf32, #tpu.memory_space<smem>>
      %cst_26 = arith.constant 0.000000e+00 : f32
      %c0_27 = arith.constant 0 : index
      %c2_28 = arith.constant 2 : index
      %78 = memref.load %arg2[%c0_27, %c2_28] : memref<1x3xf32, #tpu.memory_space<smem>>
      memref.store %cst_26, %arg2[%c0_27, %c2_28] : memref<1x3xf32, #tpu.memory_space<smem>>
    } else {
    }
    %c0 = arith.constant 0 : index
    %c0_1 = arith.constant 0 : index
    %3 = vector.load %arg1[%c0, %c0_1] : memref<8x128xf32, #tpu.memory_space<vmem>>, vector<8x128xf32>
    %4 = vector.extract_strided_slice %3 {offsets = [0, 0], sizes = [1, 128], strides = [1, 1]} : vector<8x128xf32> to vector<1x128xf32>
    %5 = vector.extract_strided_slice %3 {offsets = [1, 0], sizes = [1, 128], strides = [1, 1]} : vector<8x128xf32> to vector<1x128xf32>
    %6 = vector.extract_strided_slice %3 {offsets = [2, 0], sizes = [1, 128], strides = [1, 1]} : vector<8x128xf32> to vector<1x128xf32>
    %7 = vector.extract_strided_slice %3 {offsets = [3, 0], sizes = [1, 128], strides = [1, 1]} : vector<8x128xf32> to vector<1x128xf32>
    %8 = vector.extract_strided_slice %3 {offsets = [4, 0], sizes = [1, 128], strides = [1, 1]} : vector<8x128xf32> to vector<1x128xf32>
    %9 = vector.extract_strided_slice %3 {offsets = [5, 0], sizes = [1, 128], strides = [1, 1]} : vector<8x128xf32> to vector<1x128xf32>
    %10 = arith.mulf %4, %4 : vector<1x128xf32>
    %11 = arith.mulf %6, %6 : vector<1x128xf32>
    %12 = arith.addf %10, %11 : vector<1x128xf32>
    %13 = arith.mulf %8, %8 : vector<1x128xf32>
    %14 = arith.addf %12, %13 : vector<1x128xf32>
    %15 = arith.mulf %5, %5 : vector<1x128xf32>
    %16 = arith.mulf %7, %7 : vector<1x128xf32>
    %17 = arith.addf %15, %16 : vector<1x128xf32>
    %18 = arith.mulf %9, %9 : vector<1x128xf32>
    %19 = arith.addf %17, %18 : vector<1x128xf32>
    %20 = arith.mulf %4, %5 : vector<1x128xf32>
    %21 = arith.mulf %6, %7 : vector<1x128xf32>
    %22 = arith.addf %20, %21 : vector<1x128xf32>
    %23 = arith.mulf %8, %9 : vector<1x128xf32>
    %24 = arith.addf %22, %23 : vector<1x128xf32>
    %25 = arith.addf %14, %19 : vector<1x128xf32>
    %26 = arith.subf %14, %19 : vector<1x128xf32>
    %cst = arith.constant 4.000000e+00 : f32
    %27 = vector.broadcast %cst : f32 to vector<1x128xf32>
    %28 = arith.mulf %27, %24 : vector<1x128xf32>
    %29 = arith.mulf %28, %24 : vector<1x128xf32>
    %30 = arith.mulf %26, %26 : vector<1x128xf32>
    %31 = arith.addf %29, %30 : vector<1x128xf32>
    %32 = math.sqrt %31 : vector<1x128xf32>
    %33 = arith.addf %25, %32 : vector<1x128xf32>
    %cst_2 = arith.constant 5.000000e-01 : f32
    %34 = vector.broadcast %cst_2 : f32 to vector<1x128xf32>
    %35 = arith.mulf %34, %33 : vector<1x128xf32>
    %36 = arith.subf %25, %32 : vector<1x128xf32>
    %cst_3 = arith.constant 5.000000e-01 : f32
    %37 = vector.broadcast %cst_3 : f32 to vector<1x128xf32>
    %38 = arith.mulf %37, %36 : vector<1x128xf32>
    %cst_4 = arith.constant 1.000000e+00 : f32
    %39 = vector.broadcast %cst_4 : f32 to vector<1x128xf32>
    %40 = arith.subf %35, %39 : vector<1x128xf32>
    %41 = math.absf %40 : vector<1x128xf32>
    %cst_5 = arith.constant 1.000000e+00 : f32
    %42 = vector.broadcast %cst_5 : f32 to vector<1x128xf32>
    %43 = arith.subf %38, %42 : vector<1x128xf32>
    %44 = math.absf %43 : vector<1x128xf32>
    %45 = tpu.iota {dimensions = array<i32: 1>} : vector<1x128xi32>
    %c128_i32 = arith.constant 128 : i32
    %46 = arith.muli %arg0, %c128_i32 : i32
    %47 = vector.broadcast %46 : i32 to vector<1x128xi32>
    %48 = arith.addi %47, %45 : vector<1x128xi32>
    %c8_i32 = arith.constant 8 : i32
    %49 = vector.broadcast %c8_i32 : i32 to vector<1x128xi32>
    %50 = arith.cmpi slt, %48, %49 : vector<1x128xi32>
    %cst_6 = arith.constant 0.000000e+00 : f32
    %51 = vector.broadcast %cst_6 : f32 to vector<1x128xf32>
    %c0_7 = arith.constant 0 : index
    %c0_8 = arith.constant 0 : index
    %52 = memref.load %arg2[%c0_7, %c0_8] : memref<1x3xf32, #tpu.memory_space<smem>>
    %53 = arith.select %50, %32, %51 : vector<1x128xi1>, vector<1x128xf32>
    %54 = vector.shape_cast %53 : vector<1x128xf32> to vector<1x1x128xf32>
    %cst_9 = arith.constant dense<0.000000e+00> : vector<1xf32>
    %55 = vector.multi_reduction <add>, %54, %cst_9 [1, 2] : vector<1x1x128xf32> to vector<1xf32>
    %56 = vector.shape_cast %55 : vector<1xf32> to vector<1x1x1xf32>
    %57 = vector.extract %56[0, 0, 0] : f32 from vector<1x1x1xf32>
    %58 = arith.addf %52, %57 : f32
    %c0_10 = arith.constant 0 : index
    %c0_11 = arith.constant 0 : index
    %59 = memref.load %arg2[%c0_10, %c0_11] : memref<1x3xf32, #tpu.memory_space<smem>>
    memref.store %58, %arg2[%c0_10, %c0_11] : memref<1x3xf32, #tpu.memory_space<smem>>
    %c0_12 = arith.constant 0 : index
    %c1 = arith.constant 1 : index
    %60 = memref.load %arg2[%c0_12, %c1] : memref<1x3xf32, #tpu.memory_space<smem>>
    %61 = arith.select %50, %41, %51 : vector<1x128xi1>, vector<1x128xf32>
    %62 = vector.shape_cast %61 : vector<1x128xf32> to vector<1x1x128xf32>
    %cst_13 = arith.constant dense<0.000000e+00> : vector<1xf32>
    %63 = vector.multi_reduction <add>, %62, %cst_13 [1, 2] : vector<1x1x128xf32> to vector<1xf32>
    %64 = vector.shape_cast %63 : vector<1xf32> to vector<1x1x1xf32>
    %65 = vector.extract %64[0, 0, 0] : f32 from vector<1x1x1xf32>
    %66 = arith.addf %60, %65 : f32
    %c0_14 = arith.constant 0 : index
    %c1_15 = arith.constant 1 : index
    %67 = memref.load %arg2[%c0_14, %c1_15] : memref<1x3xf32, #tpu.memory_space<smem>>
    memref.store %66, %arg2[%c0_14, %c1_15] : memref<1x3xf32, #tpu.memory_space<smem>>
    %c0_16 = arith.constant 0 : index
    %c2 = arith.constant 2 : index
    %68 = memref.load %arg2[%c0_16, %c2] : memref<1x3xf32, #tpu.memory_space<smem>>
    %69 = arith.select %50, %44, %51 : vector<1x128xi1>, vector<1x128xf32>
    %70 = vector.shape_cast %69 : vector<1x128xf32> to vector<1x1x128xf32>
    %cst_17 = arith.constant dense<0.000000e+00> : vector<1xf32>
    %71 = vector.multi_reduction <add>, %70, %cst_17 [1, 2] : vector<1x1x128xf32> to vector<1xf32>
    %72 = vector.shape_cast %71 : vector<1xf32> to vector<1x1x1xf32>
    %73 = vector.extract %72[0, 0, 0] : f32 from vector<1x1x1xf32>
    %74 = arith.addf %68, %73 : f32
    %c0_18 = arith.constant 0 : index
    %c2_19 = arith.constant 2 : index
    %75 = memref.load %arg2[%c0_18, %c2_19] : memref<1x3xf32, #tpu.memory_space<smem>>
    memref.store %74, %arg2[%c0_18, %c2_19] : memref<1x3xf32, #tpu.memory_space<smem>>
    return
  }
  func.func @transform_0(%arg0: i32) -> (i32, i32) {
    %c0_i32 = arith.constant 0 : i32
    %c0_i32_0 = arith.constant 0 : i32
    return %c0_i32, %arg0 : i32, i32
  }
  func.func @transform_1(%arg0: i32) -> (i32, i32) {
    %c0_i32 = arith.constant 0 : i32
    %c0_i32_0 = arith.constant 0 : i32
    %c0_i32_1 = arith.constant 0 : i32
    return %c0_i32, %c0_i32_0 : i32, i32
  }
}

</mosaic_0001>

<bundles_post_ra>
// kernel: tpu_custom_call.1
= control target key start
LH: loop header
LB: loop body
LE: loop exit
PB: predicated region body
PF: predicated region fallthrough
CT: control target
= control target key end

     0   :  { %6 = vsyncpa [#allocation3], 0  ;;  %s212_s0 = inlined_call_operand.hbm [shape: f32[8,128], index: 0, kind: input, shape index: {}]   ;;  %s213_s1 = inlined_call_operand.hbm [shape: f32[1,3], index: 1, kind: output, shape index: {}]  }
   0x1   :  { %7 = vsyncpa [#allocation4], 0  ;;  %s188_s6 = smov [#allocation2]  }
   0x2   :  { %s14_s7 = sshll.u32 %s188_s6, 4  ;;  %s15_s7 = int_to_ptr.vmem [resolvable:$true] %s14_s7 }
   0x3   :  { %s164_s8 = scalar_lea.vmem %s15_s7, 128  ;;  %p169_p1 = scmp.lt.s32.totalorder %s15_s7, %s15_s7 }
   0x4   :  { %p165_p0 = scmp.ne.s32.totalorder %s15_s7, %s164_s8  ;;  %p170_p2 = scmp.lt.s32.totalorder %s164_s8, %s164_s8 }
   0x6   :  { %p171_p3 = por %p170_p2, %p169_p1 }
   0x8   :  { %p172_p4 = pnand %p171_p3, %p165_p0 }
   0xa   :  { %175 = shalt.err (!%p172_p4)
}
   0xb   :  { %17 = dma.hbm_to_vmem [thread:$0]  %s212_s0, 128, %s15_s7, [#allocation3]  }
   0xc   :  { %184 = dma.done.wait [#allocation3], 128  }
   0xd   :  { %185 = vsyncadd [#allocation3], 4294967168  ;;  %v31_v0 = vld [vmem:[#allocation2] sm:$0xff]  ;;  %v75_v18 = vlaneseq  ;;  %vm83_vm3 = vcmask 1040384   ;;  %s189_s13 = smov [#allocation5]  }
   0xe   :  { %v32_v1 = vmul.f32 %v31_v0, %v31_v0  ;;  %v41_v2 = vrot.slane %v31_v0, 1 }
   0xf   :  { %v76_v19 = vand.u32 127, %v75_v18 }
  0x10   :  { %v34_v3 = vrot.slane %v32_v1, 2  ;;  %v37_v4 = vrot.slane %v32_v1, 4  ;;  %v43_v5 = vmul.f32 %v41_v2, %v31_v0 }
  0x11   :  { %vm80_vm2 = vcmp.lt.s32.totalorder %v76_v19, 8 }
  0x12   :  { %v36_v6 = vadd.f32 %v34_v3, %v32_v1  ;;  %v45_v7 = vrot.slane %v43_v5, 2  ;;  %v48_v8 = vrot.slane %v43_v5, 4 }
  0x14   :  { %v39_v9 = vadd.f32 %v37_v4, %v36_v6  ;;  %v47_v10 = vadd.f32 %v45_v7, %v43_v5 }
  0x16   :  { %v50_v11 = vadd.f32 %v48_v8, %v47_v10  ;;  %v52_v12 = vrot.slane %v39_v9, 1 }
  0x18   :  { %v55_v13 = vsub.f32 %v39_v9, %v52_v12  ;;  %v56_v14 = vmul.f32 4.0, %v50_v11  ;;  %v54_v23 = vadd.f32 %v52_v12, %v39_v9 }
  0x1a   :  { %v57_v15 = vmul.f32 %v56_v14, %v50_v11  ;;  %v58_v16 = vmul.f32 %v55_v13, %v55_v13 }
  0x1c   :  { %v59_v17 = vadd.f32 %v58_v16, %v57_v15 }
  0x1e   :  { %154 = vrsqrt.f32 %v59_v17  ;;  %vm62_vm0 = vcmp.eq.f32.partialorder %v59_v17, inf  ;;  %v65_v21 = vand.u32 2147483648, %v59_v17  ;;  %vm64_vm1 = vcmp.eq.f32.partialorder %v59_v17, 0.0 }
  0x2b   :  { %v155_v20 = vpop.eup %154 }
  0x2c   :  { %v61_v22 = vmul.f32 %v155_v20, %v59_v17 }
  0x2e   :  { %v63_v24 = vsel %vm62_vm0, %v59_v17, %v61_v22 }
  0x2f   :  { %v66_v25 = vsel %vm64_vm1, %v65_v21, %v63_v24 }
  0x30   :  { %v82_v26 = vsel %vm80_vm2, %v66_v25, 0.0  ;;  %v69_v27 = vsub.f32 %v54_v23, %v66_v25  ;;  %v67_v28 = vadd.f32 %v66_v25, %v54_v23 }
  0x31   :  { %v84_v29 = vsel %vm83_vm3, %v82_v26, 0.0 }
  0x32   :  { %85 = vadd.xlane.f32.xlu0 %v84_v29  ;;  %v70_v30 = vmul.f32 0.5, %v69_v27  ;;  %v68_v31 = vmul.f32 0.5, %v67_v28 }
  0x34   :  { %v142_v32 = vadd.f32 -1.0, %v70_v30  ;;  %v141_v33 = vadd.f32 -1.0, %v68_v31 }
  0x36   :  { %v74_v34 = vand.u32 2147483647, %v142_v32  ;;  %v72_v35 = vand.u32 2147483647, %v141_v33 }
  0x38   :  { %v113_v36 = vsel %vm80_vm2, %v74_v34, 0.0  ;;  %v98_v37 = vsel %vm80_vm2, %v72_v35, 0.0 }
  0x39   :  { %v114_v38 = vsel %vm83_vm3, %v113_v36, 0.0  ;;  %v99_v39 = vsel %vm83_vm3, %v98_v37, 0.0 }
  0x3a   :  { %115 = vadd.xlane.f32.xlu1 %v114_v38  ;;  %100 = vadd.xlane.f32.xlu0 %v99_v39 }
  0xbb   :  { %v86_v40 = vpop.xlane.xlu0 %85 }
  0xbc   :  { %v87_v41 = vrot.slane %v86_v40, 4 }
  0xbe   :  { %v88_v42 = vadd.f32 %v87_v41, %v86_v40 }
  0xc0   :  { %v89_v43 = vrot.slane %v88_v42, 2 }
  0xc2   :  { %v90_v44 = vadd.f32 %v89_v43, %v88_v42 }
  0xc3   :  { %v116_v45 = vpop.xlane.xlu1 %115  ;;  %v101_v46 = vpop.xlane.xlu0 %100 }
  0xc4   :  { %v117_v47 = vrot.slane %v116_v45, 4  ;;  %v102_v48 = vrot.slane %v101_v46, 4  ;;  %v91_v49 = vrot.slane %v90_v44, 1 }
  0xc6   :  { %v118_v50 = vadd.f32 %v117_v47, %v116_v45  ;;  %v103_v51 = vadd.f32 %v102_v48, %v101_v46  ;;  %v92_v52 = vadd.f32 %v91_v49, %v90_v44 }
  0xc8   :  { %v119_v53 = vrot.slane %v118_v50, 2  ;;  %v104_v54 = vrot.slane %v103_v51, 2  ;;  %145 = vpush %v92_v52 }
  0xca   :  { %v120_v55 = vadd.f32 %v119_v53, %v118_v50  ;;  %v105_v56 = vadd.f32 %v104_v54, %v103_v51 }
  0xcc   :  { %v106_v57 = vrot.slane %v105_v56, 1  ;;  %v121_v58 = vrot.slane %v120_v55, 1 }
  0xce   :  { %v107_v59 = vadd.f32 %v106_v57, %v105_v56  ;;  %v122_v60 = vadd.f32 %v121_v58, %v120_v55 }
  0xd0   :  { %147 = vpush %v107_v59 }
  0xd1   :  { %149 = vpush %v122_v60 }
  0xf9   :  { %s146_s0 = spop %145 }
  0xfa   :  { %96 = sst [smem:[#allocation5]] %s146_s0 }
 0x101   :  { %s148_s11 = spop %147 }
 0x102   :  { %s150_s12 = spop %149  ;;  %111 = sst [smem:[#allocation5 + $0x1]] %s148_s11 }
 0x103   :  { %126 = sst [smem:[#allocation5 + $0x2]] %s150_s12 }
 0x104   :  { %134 = dma.smem_to_hbm %s189_s13, 16, %s213_s1, [#allocation4]  }
 0x105   :  { %186 = dma.done.wait [#allocation4], 16  }
 0x106   :  { %187 = vsyncadd [#allocation4], 4294967280 }
 0x107   :  { %138 = sfence }
 0x108   :  { %139 = vsyncpa [#allocation3], 1 }
 0x109   :  { %140 = vsyncpa [#allocation4], 1 }

</bundles_post_ra>
